<compile_context>
chip_gen: v5e
topology: v5e:2x2
jax: 0.10.0
libtpu: 0.0.40
codegen_flags: <defaults>
</compile_context>

<pallas_src>
import functools

import jax
import jax.numpy as jnp
from jax.experimental import pallas as pl
from jax.experimental.pallas import tpu as pltpu

_HP = 128   # padded hidden width (>= 60): full lane tile
_NP = 128   # padded output width (>= a_dim): full lane tile


def _round_up(x, m):
    return (x + m - 1) // m * m


def anet_kernel(s_ref, w_ref, b_ref, o_ref, *, in_dim, in_dim_pad):
    # s_ref: [tile_b, in_dim]          activations (batch-tiled)
    # w_ref: [in_dim_pad + 128, 128]   packed weights: rows 0:in_dim = W1f,
    #                                  rows in_dim_pad: = Wof (aligned slices)
    # b_ref: [2, 128]                  row 0 = fused fc1/fc2 bias, row 1 = out bias
    # o_ref: [tile_b, 128]             lane-dense padded output
    x = s_ref[...]
    w1f = w_ref[0:in_dim, :]                      # [in_dim, 128]
    wof = w_ref[in_dim_pad:in_dim_pad + _HP, :]   # [128, 128]
    b1f = b_ref[0:1, :]                           # [1, 128]
    bof = b_ref[1:2, :]                           # [1, 128]

    # h[:, 0:30]  = relu(candidate @ fc1.W^T + fc1.b)
    # h[:, 30:60] = relu(selected  @ fc2.W^T + fc2.b)   (block-diagonal fusion)
    h = jnp.dot(x, w1f, preferred_element_type=jnp.float32)
    h = jnp.maximum(h + b1f, 0.0)

    # out = relu(cat(c, s) @ out.W^T + out.b), padded to 128 lanes
    y = jnp.dot(h, wof, preferred_element_type=jnp.float32)
    o_ref[...] = jnp.maximum(y + bof, 0.0)


def pack_params(params, *, a_dim):
    """Pack (w1, b1, w2, b2, wo, bo) into one weight slab + one bias slab."""
    w1, b1, w2, b2, wo, bo = (params["w1"], params["b1"], params["w2"],
                              params["b2"], params["wo"], params["bo"])
    cand_dim = 16 * a_dim
    in_dim = 22 * a_dim
    in_dim_pad = _round_up(in_dim, 8)

    # Block-diagonal stage-1 weight: s @ W1f == [cand @ w1.T | sel @ w2.T | 0...]
    w1f = jnp.zeros((in_dim, _HP), jnp.float32)
    w1f = w1f.at[:cand_dim, 0:30].set(w1.T.astype(jnp.float32))
    w1f = w1f.at[cand_dim:, 30:60].set(w2.T.astype(jnp.float32))

    # Fused stage-2 weight, padded to a full 128x128 lane tile.
    wof = jnp.zeros((_HP, _NP), jnp.float32)
    wof = wof.at[0:60, 0:a_dim].set(wo.T.astype(jnp.float32))

    wpack = jnp.zeros((in_dim_pad + _HP, _NP), jnp.float32)
    wpack = wpack.at[:in_dim, :].set(w1f)
    wpack = wpack.at[in_dim_pad:, :].set(wof)

    bpack = jnp.zeros((2, _NP), jnp.float32)
    bpack = bpack.at[0, 0:30].set(b1.astype(jnp.float32))
    bpack = bpack.at[0, 30:60].set(b2.astype(jnp.float32))
    bpack = bpack.at[1, 0:a_dim].set(bo.astype(jnp.float32))
    return wpack, bpack, in_dim, in_dim_pad


def anet_forward(s, params, *, a_dim, tile_b=2048):
    B, in_dim = s.shape
    assert in_dim == 22 * a_dim, "input must be [B, 16*a_dim + 6*a_dim]"

    wpack, bpack, in_dim_p, in_dim_pad = pack_params(params, a_dim=a_dim)
    assert in_dim_p == in_dim

    # Effective batch tile: large (amortizes ~0.35 us/step + DMA setup), but no
    # larger than the 8-rounded batch; pad the batch so ragged B is handled.
    tile_b = max(8, min(int(tile_b), _round_up(B, 8)))
    tile_b = _round_up(tile_b, 8)
    B_pad = _round_up(B, tile_b)
    s_in = jnp.pad(s, ((0, B_pad - B), (0, 0))) if B_pad != B else s
    grid = (B_pad // tile_b,)

    flops = 2 * B_pad * (in_dim * _HP + _HP * _NP)
    bytes_accessed = 4 * (B_pad * in_dim + B_pad * _NP + wpack.size + bpack.size)

    out_padded = pl.pallas_call(
        functools.partial(anet_kernel, in_dim=in_dim, in_dim_pad=in_dim_pad),
        out_shape=jax.ShapeDtypeStruct((B_pad, _NP), jnp.float32),
        grid_spec=pltpu.PrefetchScalarGridSpec(
            num_scalar_prefetch=0,
            grid=grid,
            in_specs=[
                pl.BlockSpec((tile_b, in_dim), lambda i: (i, 0)),   # activations
                pl.BlockSpec(wpack.shape, lambda i: (0, 0)),        # packed weights
                pl.BlockSpec(bpack.shape, lambda i: (0, 0)),        # packed biases
            ],
            out_specs=pl.BlockSpec((tile_b, _NP), lambda i: (i, 0)),
        ),
        compiler_params=pltpu.CompilerParams(
            dimension_semantics=("parallel",)),
        cost_estimate=pl.CostEstimate(
            flops=int(flops), transcendentals=0,
            bytes_accessed=int(bytes_accessed)),
    )(s_in, wpack, bpack)

    return out_padded[:B, :a_dim]


def init_params(key, a_dim):
    s_dim = 16 * a_dim
    k1, k2, k3, k4, k5, k6 = jax.random.split(key, 6)
    # weights: normal(0, 0.1) as in the module's __init__
    w1 = 0.1 * jax.random.normal(k1, (30, s_dim), jnp.float32)
    w2 = 0.1 * jax.random.normal(k2, (30, 6 * a_dim), jnp.float32)
    wo = 0.1 * jax.random.normal(k3, (a_dim, 60), jnp.float32)
    # biases: PyTorch Linear default uniform(-1/sqrt(fan_in), 1/sqrt(fan_in))
    b1 = jax.random.uniform(k4, (30,), jnp.float32,
                            -1.0 / jnp.sqrt(s_dim), 1.0 / jnp.sqrt(s_dim))
    b2 = jax.random.uniform(k5, (30,), jnp.float32,
                            -1.0 / jnp.sqrt(6 * a_dim), 1.0 / jnp.sqrt(6 * a_dim))
    bo = jax.random.uniform(k6, (a_dim,), jnp.float32,
                            -1.0 / jnp.sqrt(60.0), 1.0 / jnp.sqrt(60.0))
    return dict(w1=w1, b1=b1, w2=w2, b2=b2, wo=wo, bo=bo)


def anet_reference(s, params, *, a_dim):
    cand = s[:, :16 * a_dim]
    sel = s[:, 16 * a_dim:]
    c = jax.nn.relu(cand @ params["w1"].T + params["b1"])
    se = jax.nn.relu(sel @ params["w2"].T + params["b2"])
    x = jnp.concatenate((c, se), axis=-1) @ params["wo"].T + params["bo"]
    return jax.nn.relu(x)


if __name__ == "__main__":
    a_dim = 4                      # action dim
    in_dim = 22 * a_dim            # candidate (16*a_dim) + selected (6*a_dim) = 88

    key = jax.random.PRNGKey(0)
    kx, kp = jax.random.split(key)
    params = init_params(kp, a_dim)

    # Case 1: ragged batch + multi-step parallel grid (B=48, tile_b=32 -> pad to 64).
    s1 = jax.random.normal(kx, (48, in_dim), jnp.float32)
    out1 = jax.block_until_ready(anet_forward(s1, params, a_dim=a_dim, tile_b=32))
    ref1 = anet_reference(s1, params, a_dim=a_dim)
    assert out1.shape == (48, a_dim)
    assert jnp.allclose(out1, ref1, atol=1e-5, rtol=1e-5), "mismatch vs reference (case 1)"

    # Case 2: small batch, default large-tile path collapses to a single grid step.
    s2 = jax.random.normal(jax.random.fold_in(kx, 1), (16, in_dim), jnp.float32)
    out2 = jax.block_until_ready(anet_forward(s2, params, a_dim=a_dim))
    ref2 = anet_reference(s2, params, a_dim=a_dim)
    assert out2.shape == (16, a_dim)
    assert jnp.allclose(out2, ref2, atol=1e-5, rtol=1e-5), "mismatch vs reference (case 2)"

    print("KERNEL_OK")
</pallas_src>

<mosaic_0001>
module attributes {stable_mosaic.version = 11 : i64} {
  func.func @anet_kernel(%arg0: i32, %arg1: memref<32x88xf32, #tpu.memory_space<vmem>>, %arg2: memref<216x128xf32, #tpu.memory_space<vmem>>, %arg3: memref<2x128xf32, #tpu.memory_space<vmem>>, %arg4: memref<32x128xf32, #tpu.memory_space<vmem>>) attributes {dimension_semantics = [#tpu.dimension_semantics<parallel>], iteration_bounds = array<i64: 2>, scalar_prefetch = 0 : i64, scratch_operands = 0 : i64, tpu.core_type = #tpu.core_type<tc>, window_params = [{transform_indices = @transform_0, window_bounds = array<i64: 32, 88>}, {pipeline_mode = #tpu.pipeline_mode<synchronous>, transform_indices = @transform_1, window_bounds = array<i64: 216, 128>}, {pipeline_mode = #tpu.pipeline_mode<synchronous>, transform_indices = @transform_2, window_bounds = array<i64: 2, 128>}, {transform_indices = @transform_3, window_bounds = array<i64: 32, 128>}]} {
    %c0 = arith.constant 0 : index
    %c0_0 = arith.constant 0 : index
    %0 = vector.load %arg1[%c0, %c0_0] : memref<32x88xf32, #tpu.memory_space<vmem>>, vector<32x88xf32>
    %c0_1 = arith.constant 0 : index
    %c0_2 = arith.constant 0 : index
    %1 = vector.load %arg2[%c0_1, %c0_2] : memref<216x128xf32, #tpu.memory_space<vmem>>, vector<88x128xf32>
    %c88 = arith.constant 88 : index
    %c0_3 = arith.constant 0 : index
    %2 = vector.load %arg2[%c88, %c0_3] : memref<216x128xf32, #tpu.memory_space<vmem>>, vector<128x128xf32>
    %c0_4 = arith.constant 0 : index
    %c0_5 = arith.constant 0 : index
    %3 = vector.load %arg3[%c0_4, %c0_5] : memref<2x128xf32, #tpu.memory_space<vmem>>, vector<1x128xf32>
    %c1 = arith.constant 1 : index
    %c0_6 = arith.constant 0 : index
    %4 = vector.load %arg3[%c1, %c0_6] : memref<2x128xf32, #tpu.memory_space<vmem>>, vector<1x128xf32>
    %cst = arith.constant dense<0.000000e+00> : vector<32x128xf32>
    %5 = tpu.matmul %0, %1, %cst {dimension_numbers = #tpu.dot_dimension_numbers<[1], [0], [0], [1], [0, 0, 1, 1], [], []>} : vector<32x88xf32>, vector<88x128xf32>, vector<32x128xf32> -> vector<32x128xf32>
    %6 = vector.broadcast %3 : vector<1x128xf32> to vector<32x128xf32>
    %7 = arith.addf %5, %6 : vector<32x128xf32>
    %cst_7 = arith.constant 0.000000e+00 : f32
    %8 = vector.broadcast %cst_7 : f32 to vector<32x128xf32>
    %9 = arith.maximumf %7, %8 : vector<32x128xf32>
    %cst_8 = arith.constant dense<0.000000e+00> : vector<32x128xf32>
    %10 = tpu.matmul %9, %2, %cst_8 {dimension_numbers = #tpu.dot_dimension_numbers<[1], [0], [0], [1], [0, 0, 1, 1], [], []>} : vector<32x128xf32>, vector<128x128xf32>, vector<32x128xf32> -> vector<32x128xf32>
    %11 = vector.broadcast %4 : vector<1x128xf32> to vector<32x128xf32>
    %12 = arith.addf %10, %11 : vector<32x128xf32>
    %cst_9 = arith.constant 0.000000e+00 : f32
    %13 = vector.broadcast %cst_9 : f32 to vector<32x128xf32>
    %14 = arith.maximumf %12, %13 : vector<32x128xf32>
    %c0_10 = arith.constant 0 : index
    %c0_11 = arith.constant 0 : index
    %15 = vector.load %arg4[%c0_10, %c0_11] : memref<32x128xf32, #tpu.memory_space<vmem>>, vector<32x128xf32>
    tpu.vector_store %arg4[%c0_10, %c0_11], %14 {strides = array<i32>} : memref<32x128xf32, #tpu.memory_space<vmem>>, vector<32x128xf32>,
    return
  }
  func.func @transform_0(%arg0: i32) -> (i32, i32) {
    %c0_i32 = arith.constant 0 : i32
    %c0_i32_0 = arith.constant 0 : i32
    return %arg0, %c0_i32 : i32, i32
  }
  func.func @transform_1(%arg0: i32) -> (i32, i32) {
    %c0_i32 = arith.constant 0 : i32
    %c0_i32_0 = arith.constant 0 : i32
    %c0_i32_1 = arith.constant 0 : i32
    return %c0_i32, %c0_i32_0 : i32, i32
  }
  func.func @transform_2(%arg0: i32) -> (i32, i32) {
    %c0_i32 = arith.constant 0 : i32
    %c0_i32_0 = arith.constant 0 : i32
    %c0_i32_1 = arith.constant 0 : i32
    return %c0_i32, %c0_i32_0 : i32, i32
  }
  func.func @transform_3(%arg0: i32) -> (i32, i32) {
    %c0_i32 = arith.constant 0 : i32
    %c0_i32_0 = arith.constant 0 : i32
    return %arg0, %c0_i32 : i32, i32
  }
}

</mosaic_0001>

<bundles_post_ra>
// kernel: tpu_custom_call.1
= control target key start
LH: loop header
LB: loop body
LE: loop exit
PB: predicated region body
PF: predicated region fallthrough
CT: control target
= control target key end

     0   :  { %8 = vsyncpa [#allocation3], 0  ;;  %s928_s0 = inlined_call_operand.hbm [shape: f32[64,88], index: 0, kind: input, shape index: {}]   ;;  %s929_s1 = inlined_call_operand.hbm [shape: f32[216,128], index: 1, kind: input, shape index: {}]   ;;  %s930_s2 = inlined_call_operand.hbm [shape: f32[2,128], index: 2, kind: input, shape index: {}]   ;;  %s931_s3 = inlined_call_operand.hbm [shape: f32[64,128], index: 3, kind: output, shape index: {}]  }
   0x1   :  { %10 = vsyncpa [#allocation3 + $0x1], 0 }
   0x2   :  { %11 = vsyncpa [#allocation6], 0 }
   0x3   :  { %12 = vsyncpa [#allocation4], 0 }
   0x4   :  { %14 = vsyncpa [#allocation4 + $0x1], 0  ;;  %s767_s12 = smov 0   ;;  %s769_s13 = smov 0  }
   0x5   :  { %s771_s14 = smov 0   ;;  %s773_s15 = smov 0  }
   0x6 LB: > { %s788_s16 = sadd.s32 4294967295, %s739_s15   ;;  %s450_s17 = sadd.s32 4294967294, %s739_s15   ;;  %s739_s15 = sphi %s773_s15, %s941_s15   ;;  %s735_s14 = sphi %s771_s14, %s940_s14   ;;  %s731_s13 = sphi %s769_s13, %s939_s13   ;;  %s727_s12 = sphi %s767_s12, %s938_s12  }
   0x7   : > { %p40_p0 = scmp.ne.s32.totalorder %s731_s13, %s727_s12  ;;  %p41_p1 = scmp.eq.s32.totalorder %s788_s16, 0 }
   0x8   : > { %p106_p2 = scmp.eq.s32.totalorder %s788_s16, 1  ;;  %p112_p3 = scmp.eq.s32.totalorder %s450_s17, 1 }
   0x9   : > { %p797_p4 = por %p41_p1, %p40_p0  ;;  %p451_p5 = scmp.ge.s32.totalorder %s739_s15, 1 }
   0xa   : > { %p802_p6 = por %p112_p3, %p40_p0  ;;  %p119_p7 = scmp.lt.s32.totalorder %s739_s15, 3 }
   0xb   : > { %s130_s22 = sshll.u32 %s929_s1, 4  ;;  %s741_s24 = smov [#allocation5]   ;;  %s131_s22 = int_to_ptr.hbm [resolvable:$true] %s130_s22 }
   0xc   : > { %p810_p8 = pnand %p451_p5, %p119_p7  ;;  %s132_s25 = sshll.u32 %s741_s24, 4  ;;  %s133_s25 = int_to_ptr.vmem [resolvable:$true] %s132_s25 }
   0xd   : > { %s145_s28 = sshll.u32 %s930_s2, 4  ;;  %s742_s29 = smov 128   ;;  %s146_s28 = int_to_ptr.hbm [resolvable:$true] %s145_s28 }
   0xe   : > { %p518_p9 = pneg %p810_p8  ;;  %s743_s30 = smov 8  }
   0xf   : > { %s744_s4 = smov [#allocation7]   ;;  %s826_s6 = sadd.s32 1, %s739_s15  }
  0x10   : > { %p519_p10 = pnand %p518_p9, %p41_p1  ;;  %s147_s5 = sshll.u32 %s744_s4, 4  ;;  %s148_s5 = int_to_ptr.vmem [resolvable:$true] %s147_s5 }
  0x11   : > { %s27_s7 = sadd.s32 1, %s735_s14  ;;  %s24_s8 = ssub.s32 %s739_s15, %s826_s6 }
  0x12   : > { %521 = dma.hbm_to_vmem [thread:$0]  (!%p519_p10), %s131_s22, 3456, %s133_s25, [#allocation6], %s742_s29, %s742_s29, %s743_s30  }
  0x13   : > { %524 = dma.hbm_to_vmem [thread:$0]  (!%p519_p10), %s146_s28, 32, %s148_s5, [#allocation6]  }
  0x14   : > { %p34_p12 = scmp.ne.s32.totalorder %s735_s14, %s731_s13  ;;  %p25_p13 = scmp.eq.s32.totalorder %s24_s8, 0 }
  0x15   : > { %p35_p0 = scmp.eq.s32.totalorder %s739_s15, 0  ;;  %p535_p5 = scmp.lt.s32.totalorder %s739_s15, 2 }
  0x16   : > { %p836_p3 = por %p106_p2, %p34_p12  ;;  %s158_s11 = sand.u32 1, %s735_s14  }
  0x17   : > { %s842_s10 = scalar_select %p25_p13, %s735_s14, %s27_s7  }
  0x18   : > { %p36_p7 = por %p35_p0, %p34_p12  ;;  %s455_s17 = sshll.u32 %s158_s11, 5 }
  0x19   : > { %s472_s20 = sshll.u32 %s739_s15, 5  ;;  %s162_s25 = scalar_lea.vmem [#allocation2], %s455_s17 }
  0x1a   : > { %s167_s24 = scalar_lea.hbm %s928_s0, %s472_s20  ;;  %s170_s26 = sshll.u32 %s162_s25, 4  ;;  %s171_s26 = int_to_ptr.vmem [resolvable:$true] %s170_s26 }
  0x1b   : > { %s168_s27 = sshll.u32 %s167_s24, 4  ;;  %p849_p2 = pnand %p535_p5, %p36_p7  ;;  %s169_s27 = int_to_ptr.hbm [resolvable:$true] %s168_s27 }
  0x1c   : > { %s159_s4 = scalar_lea.sflag [#allocation3], %s158_s11  ;;  %s639_s5 = sshra.s32 %s169_s27, 4  ;;  %s640_s5 = int_to_ptr.hbm [resolvable:$true] %s639_s5 }
  0x1d   : > { %s641_s7 = scalar_lea.hbm %s640_s5, 32  ;;  %p643_p10 = pneg %p849_p2 }
  0x1e   : > { %p642_p9 = scmp.ne.s32.totalorder %s640_s5, %s641_s7  ;;  %s646_s20 = scalar_lea.hbm %s928_s0, 64 }
  0x1f   : > { %p647_p0 = scmp.lt.s32.totalorder %s640_s5, %s928_s0  ;;  %p648_p5 = scmp.lt.s32.totalorder %s646_s20, %s641_s7 }
  0x20   : > { %p644_p12 = pnand %p643_p10, %p642_p9 }
  0x21   : > { %p649_p7 = por %p648_p5, %p647_p0 }
  0x22   : > { %p645_p13 = pneg %p644_p12 }
  0x24   : > { %p650_p11 = pnand %p649_p7, %p645_p13 }
  0x26   : > { %653 = shalt.err (!%p650_p11)
}
  0x27   : > { %528 = dma.hbm_to_vmem [thread:$0]  (!%p849_p2), %s169_s27, 512, %s171_s26, %s159_s4, %s742_s29, %s742_s29, %s743_s30  }
  0x28   : > { %182 = sbr.rel (%p810_p8) target bundleno = 364 (0x16c), region = 32  ;;  %s869_s11 = sand.u32 (!%p810_p8), 1, %s731_s13  }
  0x29   : > { %s459_s24 = sshll.u32 (!%p810_p8), %s869_s11, 5  ;;  %s185_s25 = scalar_lea.sflag (!%p810_p8), [#allocation3], %s869_s11 }
  0x2a   : > { %s875_s5 = scalar_lea.vmem (!%p810_p8), [#allocation2], %s459_s24 }
  0x2d   : > { %714 = dma.done.wait (%p797_p4), %s185_s25, 512  }
  0x2e   : > { %716 = vsyncadd (%p797_p4), %s185_s25, 4294966784 }
  0x2f   : > { %718 = dma.done.wait (%p41_p1), [#allocation6], 3488  }
  0x30   : > { %720 = vsyncadd (%p41_p1), [#allocation6], 4294963808  ;;  %v238_v0 = vld [vmem:[#allocation5 + $0x50] sm:$0xff]  ;;  %v237_v1 = vld [vmem:[#allocation5 + $0x48] sm:$0xff]  ;;  %vm258_vm0 = vcmask 719872   ;;  %s221_s18 = scalar_lea.vmem [#allocation8], %s459_s24 }
  0x31   : > { %276 = vmatpush.msra.mxu0 %v238_v0  ;;  %v236_v2 = vld [vmem:[#allocation5 + $0x40] sm:$0xff]  ;;  %v235_v3 = vld [vmem:[#allocation5 + $0x38] sm:$0xff]  ;;  %v234_v4 = vld [vmem:[#allocation5 + $0x30] sm:$0xff]  ;;  %s473_s23 = sshll.u32 %s788_s16, 5  ;;  %s355_s27 = sshll.u32 %s221_s18, 4  ;;  %s356_s27 = int_to_ptr.vmem [resolvable:$true] %s355_s27 }
  0x32   : > { %v233_v5 = vld [vmem:[#allocation5 + $0x28] sm:$0xff]  ;;  %v232_v6 = vld [vmem:[#allocation5 + $0x20] sm:$0xff]  ;;  %v231_v7 = vld [vmem:[#allocation5 + $0x18] sm:$0xff]  ;;  %s354_s26 = scalar_lea.hbm %s931_s3, %s473_s23  ;;  %s343_s4 = scalar_lea.sflag [#allocation4], %s869_s11 }
  0x33   : > { %277 = vmatpush.msra.mxu0 %v237_v1  ;;  %v230_v8 = vld [vmem:[#allocation5 + $0x10] sm:$0xff]  ;;  %v253_v10 = vld [vmem:[#allocation5 + $0xc8] sm:$0xff]  ;;  %v252_v12 = vld [vmem:[#allocation5 + $0xc0] sm:$0xff]  ;;  %s357_s28 = sshll.u32 %s354_s26, 4  ;;  %s689_s20 = scalar_lea.hbm %s931_s3, 64  ;;  %s358_s28 = int_to_ptr.hbm [resolvable:$true] %s357_s28 }
  0x34   : > { %v254_v9 = vld [vmem:[#allocation5 + $0xd0] sm:$0xff]  ;;  %v229_v11 = vld [vmem:[#allocation5 + $0x8] sm:$0xff]  ;;  %v228_v13 = vld [vmem:[#allocation5] sm:$0xff]  ;;  %s683_s7 = sshra.s32 %s358_s28, 4  ;;  %s684_s7 = int_to_ptr.hbm [resolvable:$true] %s683_s7 }
  0x35   : > { %278 = vmatpush.msra.mxu0 %v236_v2  ;;  %305 = vmatpush.msra.mxu1 %v254_v9  ;;  %v251_v14 = vld [vmem:[#allocation5 + $0xb8] sm:$0xff]  ;;  %v224_v15 = vld [vmem:[%s875_s5] sm:$0xff]  ;;  %v250_v16 = vld [vmem:[#allocation5 + $0xb0] sm:$0xff]  ;;  %s685_s8 = scalar_lea.hbm %s684_s7, 32  ;;  %p690_p11 = scmp.lt.s32.totalorder %s684_s7, %s931_s3 }
  0x36   : > { %474 = vmatpush.msra.mxu2 %v254_v9  ;;  %475 = vmatpush.msra.mxu3 %v254_v9  ;;  %v249_v17 = vld [vmem:[#allocation5 + $0xa8] sm:$0xff]  ;;  %v248_v18 = vld [vmem:[#allocation5 + $0xa0] sm:$0xff]  ;;  %v247_v19 = vld [vmem:[#allocation5 + $0x98] sm:$0xff]  ;;  %p686_p1 = scmp.ne.s32.totalorder %s684_s7, %s685_s8  ;;  %p691_p2 = scmp.lt.s32.totalorder %s689_s20, %s685_s8 }
  0x37   : > { %279 = vmatpush.msra.mxu0 %v235_v3  ;;  %306 = vmatpush.msra.mxu1 %v253_v10  ;;  %v225_v20 = vld [vmem:[%s875_s5 + $0x8] sm:$0xff]  ;;  %v246_v21 = vld [vmem:[#allocation5 + $0x90] sm:$0xff]  ;;  %v244_v23 = vld [vmem:[#allocation5 + $0x80] sm:$0xff] }
  0x38   : > { %476 = vmatpush.msra.mxu2 %v253_v10  ;;  %477 = vmatpush.msra.mxu3 %v253_v10  ;;  %v245_v22 = vld [vmem:[#allocation5 + $0x88] sm:$0xff]  ;;  %v243_v24 = vld [vmem:[#allocation5 + $0x78] sm:$0xff]  ;;  %v226_v25 = vld [vmem:[%s875_s5 + $0x10] sm:$0xff]  ;;  %p687_p4 = pnand %p686_p1, %p836_p3  ;;  %p692_p9 = por %p691_p2, %p690_p11 }
  0x39   : > { %280 = vmatpush.msra.mxu0 %v234_v4  ;;  %307 = vmatpush.msra.mxu1 %v252_v12  ;;  %v242_v26 = vld [vmem:[#allocation5 + $0x70] sm:$0xff]  ;;  %v227_v27 = vld [vmem:[%s875_s5 + $0x18] sm:$0xff]  ;;  %v241_v28 = vld [vmem:[#allocation5 + $0x68] sm:$0xff] }
  0x3a   : > { %478 = vmatpush.msra.mxu2 %v252_v12  ;;  %479 = vmatpush.msra.mxu3 %v252_v12  ;;  %v240_v29 = vld [vmem:[#allocation5 + $0x60] sm:$0xff]  ;;  %v239_v30 = vld [vmem:[#allocation5 + $0x58] sm:$0xff]  ;;  %p688_p8 = pneg %p687_p4 }
  0x3b   : > { %281 = vmatpush.msra.mxu0 %v233_v5  ;;  %308 = vmatpush.msra.mxu1 %v251_v14  ;;  %v577_v31 = vld [vmem:[#allocation7] ss:$0 sm:$0xff]  ;;  %v578_v44 = vld [vmem:[#allocation7 + $0x1] ss:$0 sm:$0xff] }
  0x3c   : > { %480 = vmatpush.msra.mxu2 %v251_v14  ;;  %481 = vmatpush.msra.mxu3 %v251_v14  ;;  %p693_p10 = pnand %p692_p9, %p688_p8 }
  0x3d   : > { %282 = vmatpush.msra.mxu0 %v232_v6  ;;  %309 = vmatpush.msra.mxu1 %v250_v16 }
  0x3e   : > { %482 = vmatpush.msra.mxu2 %v250_v16  ;;  %483 = vmatpush.msra.mxu3 %v250_v16 }
  0x3f   : > { %283 = vmatpush.msra.mxu0 %v231_v7  ;;  %310 = vmatpush.msra.mxu1 %v249_v17 }
  0x40   : > { %484 = vmatpush.msra.mxu2 %v249_v17  ;;  %485 = vmatpush.msra.mxu3 %v249_v17 }
  0x41   : > { %284 = vmatpush.msra.mxu0 %v230_v8  ;;  %311 = vmatpush.msra.mxu1 %v248_v18 }
  0x42   : > { %486 = vmatpush.msra.mxu2 %v248_v18  ;;  %487 = vmatpush.msra.mxu3 %v248_v18 }
  0x43   : > { %285 = vmatpush.msra.mxu0 %v229_v11  ;;  %312 = vmatpush.msra.mxu1 %v247_v19 }
  0x44   : > { %488 = vmatpush.msra.mxu2 %v247_v19  ;;  %489 = vmatpush.msra.mxu3 %v247_v19 }
  0x45   : > { %286 = vmatpush.msra.mxu0 %v228_v13  ;;  %313 = vmatpush.msra.mxu1 %v246_v21 }
  0x46   : > { %463 = vmatmul.msk.f32.vlgmr.msra.gmra.mxu0 %vm258_vm0, %v224_v15  ;;  %490 = vmatpush.msra.mxu2 %v246_v21 }
  0x47   : > { %314 = vmatpush.msra.mxu1 %v245_v22  ;;  %491 = vmatpush.msra.mxu3 %v246_v21 }
  0x48   : > { %492 = vmatpush.msra.mxu2 %v245_v22 }
  0x49   : > { %315 = vmatpush.msra.mxu1 %v244_v23  ;;  %493 = vmatpush.msra.mxu3 %v245_v22 }
  0x4a   : > { %494 = vmatpush.msra.mxu2 %v244_v23 }
  0x4b   : > { %316 = vmatpush.msra.mxu1 %v243_v24  ;;  %495 = vmatpush.msra.mxu3 %v244_v23 }
  0x4c   : > { %496 = vmatpush.msra.mxu2 %v243_v24 }
  0x4d   : > { %317 = vmatpush.msra.mxu1 %v242_v26  ;;  %497 = vmatpush.msra.mxu3 %v243_v24 }
  0x4e   : > { %464 = vmatmul.msk.f32.gmra.mxu0 %vm258_vm0, %v225_v20  ;;  %498 = vmatpush.msra.mxu2 %v242_v26 }
  0x4f   : > { %499 = vmatpush.msra.mxu3 %v242_v26  ;;  %318 = vmatpush.msra.mxu1 %v241_v28 }
  0x50   : > { %500 = vmatpush.msra.mxu2 %v241_v28 }
  0x51   : > { %501 = vmatpush.msra.mxu3 %v241_v28  ;;  %319 = vmatpush.msra.mxu1 %v240_v29 }
  0x52   : > { %502 = vmatpush.msra.mxu2 %v240_v29 }
  0x53   : > { %503 = vmatpush.msra.mxu3 %v240_v29  ;;  %320 = vmatpush.msra.mxu1 %v239_v30 }
  0x54   : > { %504 = vmatpush.msra.mxu2 %v239_v30 }
  0x55   : > { %505 = vmatpush.msra.mxu3 %v239_v30 }
  0x56   : > { %465 = vmatmul.msk.f32.gmra.mxu0 %vm258_vm0, %v226_v25 }
  0x5e   : > { %466 = vmatmul.msk.f32.gmra.mxu0 %vm258_vm0, %v227_v27 }
  0xc3   : > { %v288_v32 = vpop.f32.mrf.mxu0 }
  0xc4   : > { %v289_v33 = vadd.f32 %v577_v31, %v288_v32 }
  0xc6   : > { %v300_v34 = vmax.f32 %v289_v33, 0.0 }
  0xc8   : > { %321 = vmatmul.f32.vlgmr.msra.gmra.mxu1 %v300_v34 }
  0xcb   : > { %v291_v35 = vpop.f32.mrf.mxu0 }
  0xcc   : > { %v292_v36 = vadd.f32 %v577_v31, %v291_v35 }
  0xce   : > { %v301_v37 = vmax.f32 %v292_v36, 0.0 }
  0xd0   : > { %324 = vmatmul.f32.vlgmr.msra.gmra.mxu2 %v301_v37 }
  0xd3   : > { %v294_v38 = vpop.f32.mrf.mxu0 }
  0xd4   : > { %v295_v39 = vadd.f32 %v577_v31, %v294_v38 }
  0xd6   : > { %v302_v40 = vmax.f32 %v295_v39, 0.0 }
  0xd8   : > { %327 = vmatmul.f32.vlgmr.msra.gmra.mxu3 %v302_v40 }
  0xdb   : > { %v297_v41 = vpop.f32.mrf.mxu0 }
  0xdc   : > { %v298_v42 = vadd.f32 %v577_v31, %v297_v41 }
  0xde   : > { %v303_v43 = vmax.f32 %v298_v42, 0.0 }
  0xe0   : > { %330 = vmatmul.f32.gmra.mxu3 %v303_v43 }
 0x145   : > { %v322_v45 = vpop.f32.mrf.mxu1 }
 0x146   : > { %v323_v46 = vadd.f32 %v578_v44, %v322_v45 }
 0x148   : > { %v334_v47 = vmax.f32 %v323_v46, 0.0 }
 0x14a   : > { %338 = vst [vmem:[%s221_s18] sm:$0xff] %v334_v47 }
 0x153   : > { %v325_v48 = vpop.f32.mrf.mxu2 }
 0x154   : > { %v326_v49 = vadd.f32 %v578_v44, %v325_v48 }
 0x156   : > { %v335_v50 = vmax.f32 %v326_v49, 0.0 }
 0x158   : > { %339 = vst [vmem:[%s221_s18 + $0x8] sm:$0xff] %v335_v50 }
 0x15b   : > { %v328_v51 = vpop.f32.mrf.mxu3 }
 0x15c   : > { %v329_v52 = vadd.f32 %v578_v44, %v328_v51 }
 0x15e   : > { %v336_v53 = vmax.f32 %v329_v52, 0.0 }
 0x160   : > { %340 = vst [vmem:[%s221_s18 + $0x10] sm:$0xff] %v336_v53 }
 0x163   : > { %v331_v54 = vpop.f32.mrf.mxu3 }
 0x164   : > { %v332_v55 = vadd.f32 %v578_v44, %v331_v54 }
 0x166   : > { %v337_v56 = vmax.f32 %v332_v55, 0.0 }
 0x168   : > { %341 = vst [vmem:[%s221_s18 + $0x18] sm:$0xff] %v337_v56 }
 0x169   : > { %696 = shalt.err (!%p693_p10)
}
 0x16a   : > { %s745_s11 = smov 128   ;;  %s746_s24 = smov 8  }
 0x16b   : > { %516 = dma.vmem_to_hbm [thread:$0]  (%p836_p3), %s356_s27, 512, %s358_s28, %s343_s4, %s745_s11, %s745_s11, %s746_s24  }
 0x16c PF: > { %s372_s25 = sand.u32 1, %s727_s12   ;;  %p937_p12 = scmp.ge.s32.totalorder %s739_s15, 2 }
 0x16d   : > { %s373_s5 = scalar_lea.sflag [#allocation4], %s372_s25 }
 0x16e   : > { %p530_p13 = pnand %p937_p12, %p802_p6 }
 0x170   : > { %p531_p0 = pneg %p530_p13 }
 0x172   : > { %722 = dma.done.wait (%p531_p0), %s373_s5, 512  }
 0x173   : > { %724 = vsyncadd (%p531_p0), %s373_s5, 4294966784  ;;  %p17_p5 = scmp.ge.s32.totalorder %s826_s6, 4   ;;  %s938_s12 = smov %s731_s13 }
 0x174   : > { %s939_s13 = smov %s735_s14  ;;  %s940_s14 = smov %s842_s10 }
 0x175   : > { %s941_s15 = smov %s826_s6  ;;  %19 = sbr.rel (!%p17_p5) target bundleno = 6 (0x6), region = 85 }
 0x17a   :  { %379 = vsyncpa [#allocation3], 1 }
 0x17b   :  { %381 = vsyncpa [#allocation3 + $0x1], 1 }
 0x17c   :  { %382 = vsyncpa [#allocation6], 1 }
 0x17d   :  { %383 = vsyncpa [#allocation4], 1 }
 0x17e   :  { %385 = vsyncpa [#allocation4 + $0x1], 1 }

</bundles_post_ra>
